<compile_context>
chip_gen: v5e
topology: v5e:2x2
jax: 0.10.0
libtpu: 0.0.40
codegen_flags: <defaults>
</compile_context>

<pallas_src>
import functools
import math

import jax
import jax.numpy as jnp
from jax.experimental import pallas as pl
from jax.experimental.pallas import tpu as pltpu


LANE = 128
ACT_DTYPE = jnp.bfloat16          # activation storage dtype in HBM


def _round_up(n, m=LANE):
    return ((n + m - 1) // m) * m


_CP_CLS = getattr(pltpu, "CompilerParams", None) or getattr(pltpu, "TPUCompilerParams", None)


def _compiler_params(semantics=("parallel",)):
    """Mosaic params: megacore-parallel grid + raised (capped) scoped VMEM."""
    if _CP_CLS is None:
        return None
    vmem = 48 * 1024 * 1024                      # fits v5e/v6e/v7x physical VMEM
    try:
        cap = int(pltpu.get_tpu_info().vmem_capacity_bytes)
        vmem = min(vmem, (cap * 3) // 4)
    except Exception:
        pass
    try:
        return _CP_CLS(dimension_semantics=tuple(semantics), vmem_limit_bytes=vmem)
    except TypeError:
        try:
            return _CP_CLS(dimension_semantics=tuple(semantics))
        except TypeError:
            return None


# -----------------------------------------------------------------------------
# Pallas kernels
# -----------------------------------------------------------------------------
def fused_gn_conv_kernel(*refs, H, W, cin, groups, eps, res_mode):
    """GroupNorm -> SiLU -> Conv3x3 (+bias/time bias) [+ residual], one sample.

    res_mode: 0 = no residual, 1 = identity residual (VPU add),
              2 = 1x1-conv residual (matmul).
    """
    if res_mode == 0:
        (xp_ref, mask_ref, g_ref, b_ref, m_ref, mt_ref, w_ref, brow_ref,
         o_ref) = refs
        xres_ref = wres_ref = None
    elif res_mode == 1:
        (xp_ref, mask_ref, g_ref, b_ref, m_ref, mt_ref, w_ref, brow_ref,
         xres_ref, o_ref) = refs
        wres_ref = None
    else:
        (xp_ref, mask_ref, g_ref, b_ref, m_ref, mt_ref, w_ref, brow_ref,
         xres_ref, wres_ref, o_ref) = refs

    Hp, Wp = H + 2, W + 2
    HW = H * W
    cinp = xp_ref.shape[-1]
    coutp = o_ref.shape[-1]

    # ---- GroupNorm statistics (f32).  The zero spatial border and the zero
    #      padded channels contribute nothing to the sums; we divide by the
    #      true element count, so the stats are exact. ----
    x = xp_ref[0].astype(jnp.float32)                                  # (Hp, Wp, Cinp)
    csum = jnp.sum(jnp.sum(x, axis=0), axis=0, keepdims=True)          # (1, Cinp)
    csq = jnp.sum(jnp.sum(x * x, axis=0), axis=0, keepdims=True)       # (1, Cinp)
    gsum = jnp.dot(csum, m_ref[...], preferred_element_type=jnp.float32)   # (1, G)
    gsq = jnp.dot(csq, m_ref[...], preferred_element_type=jnp.float32)     # (1, G)
    inv_n = 1.0 / float(HW * (cin // groups))
    mean_g = gsum * inv_n
    var_g = jnp.maximum(gsq * inv_n - mean_g * mean_g, 0.0)            # clamp >= 0
    mean_c = jnp.dot(mean_g, mt_ref[...], preferred_element_type=jnp.float32)  # (1, Cinp)
    inv_c = jax.lax.rsqrt(
        jnp.dot(var_g, mt_ref[...], preferred_element_type=jnp.float32) + eps)

    # ---- normalize + affine + SiLU (all f32 elementwise; v5e-safe) ----
    y = (x - mean_c.reshape(1, 1, cinp)) * inv_c.reshape(1, 1, cinp)
    y = y * g_ref[...].reshape(1, 1, cinp) + b_ref[...].reshape(1, 1, cinp)
    y = y * (1.0 / (1.0 + jnp.exp(-y)))                                # SiLU
    # conv padding must see zeros AFTER GN+SiLU -> zero the 1-px spatial border
    y = y * mask_ref[...]                                              # (Hp, Wp, 1)

    # ---- 3x3 conv as 9 shifted views formed in VMEM, bf16 MXU, f32 acc ----
    acc = None
    for dy in range(3):
        for dx in range(3):
            patch = y[dy:dy + H, dx:dx + W, :].reshape(HW, cinp).astype(jnp.bfloat16)
            k = dy * 3 + dx
            part = jnp.dot(patch, w_ref[k * cinp:(k + 1) * cinp, :],
                           preferred_element_type=jnp.float32)
            acc = part if acc is None else acc + part
    acc = acc + brow_ref[0]                                            # bias (+ time bias)

    # ---- residual path ----
    if res_mode == 1:     # identity residual: plain add, no eye() matmul
        acc = acc + xres_ref[0].reshape(HW, coutp).astype(jnp.float32)
    elif res_mode == 2:   # 1x1-conv residual
        xr = xres_ref[0].reshape(HW, xres_ref.shape[-1]).astype(jnp.bfloat16)
        acc = acc + jnp.dot(xr, wres_ref[...], preferred_element_type=jnp.float32)

    o_ref[0] = acc.reshape(H, W, coutp).astype(o_ref.dtype)


def time_embed_kernel(e_ref, w1_ref, b1_ref, w2_ref, b2_ref, wa_ref, ba_ref, o_ref):
    # t_emb = Linear2(SiLU(Linear1(sin/cos emb))); then project to ALL resblock
    # time biases (+ their conv1 biases) in one shot -> lane-dense output.
    h = jnp.dot(e_ref[...], w1_ref[...], preferred_element_type=jnp.float32) + b1_ref[...]
    h = h * (1.0 / (1.0 + jnp.exp(-h)))
    te = jnp.dot(h, w2_ref[...], preferred_element_type=jnp.float32) + b2_ref[...]
    o_ref[...] = (jnp.dot(te, wa_ref[...], preferred_element_type=jnp.float32)
                  + ba_ref[...])


def conv1x1_kernel(x_ref, w_ref, b_ref, o_ref, *, H, W):
    cinp = x_ref.shape[-1]
    coutp = o_ref.shape[-1]
    x = x_ref[0].reshape(H * W, cinp).astype(jnp.bfloat16)
    acc = jnp.dot(x, w_ref[...], preferred_element_type=jnp.float32) + b_ref[0]
    o_ref[0] = acc.reshape(H, W, coutp).astype(o_ref.dtype)


# -----------------------------------------------------------------------------
# Pallas wrappers
# -----------------------------------------------------------------------------
def fused_gn_silu_conv3x3(xp, mask, gamma, beta, M, MT, w2d, brow, *,
                          H, W, cin, groups,
                          xres=None, wres=None, res_identity=False,
                          out_dtype=ACT_DTYPE):
    B, Hp, Wp, cinp = xp.shape
    coutp = w2d.shape[1]
    G = M.shape[1]

    args = [xp, mask, gamma, beta, M, MT, w2d, brow]
    brow_map = (lambda b: (b, 0, 0)) if brow.shape[0] > 1 else (lambda b: (0, 0, 0))
    in_specs = [
        pl.BlockSpec((1, Hp, Wp, cinp), lambda b: (b, 0, 0, 0)),
        pl.BlockSpec((Hp, Wp, 1), lambda b: (0, 0, 0)),
        pl.BlockSpec((1, cinp), lambda b: (0, 0)),
        pl.BlockSpec((1, cinp), lambda b: (0, 0)),
        pl.BlockSpec((cinp, G), lambda b: (0, 0)),
        pl.BlockSpec((G, cinp), lambda b: (0, 0)),
        pl.BlockSpec((9 * cinp, coutp), lambda b: (0, 0)),
        pl.BlockSpec((1, 1, coutp), brow_map),
    ]
    res_mode = 0
    if xres is not None:
        crp = xres.shape[-1]
        args.append(xres)
        in_specs.append(pl.BlockSpec((1, H, W, crp), lambda b: (b, 0, 0, 0)))
        if res_identity:
            res_mode = 1
        else:
            res_mode = 2
            args.append(wres)
            in_specs.append(pl.BlockSpec((crp, coutp), lambda b: (0, 0)))

    kern = functools.partial(fused_gn_conv_kernel, H=H, W=W, cin=cin,
                             groups=groups, eps=1e-5, res_mode=res_mode)
    return pl.pallas_call(
        kern,
        out_shape=jax.ShapeDtypeStruct((B, H, W, coutp), out_dtype),
        grid=(B,),
        in_specs=in_specs,
        out_specs=pl.BlockSpec((1, H, W, coutp), lambda b: (b, 0, 0, 0)),
        compiler_params=_compiler_params(("parallel",)),
    )(*args)


def time_embed_forward(temb0, w1, b1, w2, b2, wall, ball):
    B, dim = temb0.shape
    tdim = w1.shape[1]
    tot = wall.shape[1]
    return pl.pallas_call(
        time_embed_kernel,
        out_shape=jax.ShapeDtypeStruct((B, tot), jnp.float32),
        grid=(1,),
        in_specs=[pl.BlockSpec((B, dim), lambda i: (0, 0)),
                  pl.BlockSpec((dim, tdim), lambda i: (0, 0)),
                  pl.BlockSpec((1, tdim), lambda i: (0, 0)),
                  pl.BlockSpec((tdim, tdim), lambda i: (0, 0)),
                  pl.BlockSpec((1, tdim), lambda i: (0, 0)),
                  pl.BlockSpec((tdim, tot), lambda i: (0, 0)),
                  pl.BlockSpec((1, tot), lambda i: (0, 0))],
        out_specs=pl.BlockSpec((B, tot), lambda i: (0, 0)),
        compiler_params=_compiler_params(("arbitrary",)),
    )(temb0, w1, b1, w2, b2, wall, ball)


def conv1x1(x, w, b, H, W):
    B, _, _, cinp = x.shape
    coutp = w.shape[1]
    return pl.pallas_call(
        functools.partial(conv1x1_kernel, H=H, W=W),
        out_shape=jax.ShapeDtypeStruct((B, H, W, coutp), jnp.float32),
        grid=(B,),
        in_specs=[pl.BlockSpec((1, H, W, cinp), lambda bb: (bb, 0, 0, 0)),
                  pl.BlockSpec((cinp, coutp), lambda bb: (0, 0)),
                  pl.BlockSpec((1, 1, coutp), lambda bb: (0, 0, 0))],
        out_specs=pl.BlockSpec((1, H, W, coutp), lambda bb: (bb, 0, 0, 0)),
        compiler_params=_compiler_params(("parallel",)),
    )(x, w, b)


# -----------------------------------------------------------------------------
# Parameter init (deterministic, synthetic; channel dims zero-padded to 128)
# -----------------------------------------------------------------------------
def _normal(key, shape, scale=0.05):
    return scale * jax.random.normal(key, shape, dtype=jnp.float32)


def _gn_params(c, cpad, groups):
    gamma = jnp.zeros((1, cpad), jnp.float32).at[0, :c].set(1.0)
    beta = jnp.zeros((1, cpad), jnp.float32)
    ch = jnp.arange(cpad)
    cg = c // groups
    member = (ch[:, None] // cg == jnp.arange(groups)[None, :]) & (ch[:, None] < c)
    M = member.astype(jnp.float32)                      # (cpad, G)
    return gamma, beta, M, jnp.transpose(M)


def _conv3x3_weight(key, cin, cout, cinp, coutp):
    w = _normal(key, (3, 3, cin, cout))
    wp = jnp.zeros((3, 3, cinp, coutp), jnp.float32).at[:, :, :cin, :cout].set(w)
    return wp.reshape(9 * cinp, coutp).astype(jnp.bfloat16)


def init_resblock(key, cin, cout, tdim):
    cinp, coutp = _round_up(cin), _round_up(cout)
    g1 = 1 if (cin < 8 or cin % 8 != 0) else 8
    g2 = 1 if (cout < 8 or cout % 8 != 0) else 8
    ks = jax.random.split(key, 8)
    gamma1, beta1, m1, mt1 = _gn_params(cin, cinp, g1)
    gamma2, beta2, m2, mt2 = _gn_params(cout, coutp, g2)
    p = dict(
        cin=cin, cout=cout, cinp=cinp, coutp=coutp, g1=g1, g2=g2,
        gamma1=gamma1, beta1=beta1, m1=m1, mt1=mt1,
        gamma2=gamma2, beta2=beta2, m2=m2, mt2=mt2,
        w1=_conv3x3_weight(ks[0], cin, cout, cinp, coutp),
        b1=_normal(ks[1], (cout,)),
        tw=_normal(ks[2], (tdim, cout)),
        tb=_normal(ks[3], (cout,)),
        w2=_conv3x3_weight(ks[4], cout, cout, coutp, coutp),
    )
    b2 = _normal(ks[5], (cout,))
    if cin != cout:
        p['res_identity'] = False
        wr = _normal(ks[6], (cin, cout))
        p['wr'] = (jnp.zeros((cinp, coutp), jnp.float32)
                   .at[:cin, :cout].set(wr).astype(jnp.bfloat16))
        br = _normal(ks[7], (cout,))
    else:
        p['res_identity'] = True
        p['wr'] = None
        br = jnp.zeros((cout,), jnp.float32)
    p['brow2'] = jnp.zeros((1, 1, coutp), jnp.float32).at[0, 0, :cout].set(b2 + br)
    return p


def init_unet(key, img_channels=3, base_dim=8):
    tdim = base_dim * 4
    ks = jax.random.split(key, 16)
    specs = [
        ('down1', img_channels, base_dim),
        ('down2', base_dim, base_dim * 2),
        ('down3', base_dim * 2, base_dim * 4),
        ('mid', base_dim * 4, base_dim * 4),
        ('up3', base_dim * 8, base_dim * 2),
        ('up2', base_dim * 4, base_dim),
        ('up1', base_dim * 2, base_dim),
    ]
    blocks = {name: init_resblock(ks[i], ci, co, tdim)
              for i, (name, ci, co) in enumerate(specs)}

    # Consolidated time projection: columns for block i hold time_mlp_i weights
    # at that block's (lane-aligned) offset, bias column = tb_i + conv1_bias_i.
    wall_cols, ball_cols = [], []
    off = 0
    for name, _, co in specs:
        p = blocks[name]
        coutp = p['coutp']
        wall_cols.append(jnp.zeros((tdim, coutp), jnp.float32).at[:, :co].set(p['tw']))
        ball_cols.append(jnp.zeros((coutp,), jnp.float32).at[:co].set(p['tb'] + p['b1']))
        p['toff'] = off
        off += coutp
    wall = jnp.concatenate(wall_cols, axis=1)
    ball = jnp.concatenate(ball_cols)[None, :]

    base_pad = _round_up(base_dim)
    out_pad = _round_up(img_channels)
    out_w = (jnp.zeros((base_pad, out_pad), jnp.float32)
             .at[:base_dim, :img_channels].set(_normal(ks[7], (base_dim, img_channels)))
             .astype(jnp.bfloat16))
    out_b = (jnp.zeros((1, 1, out_pad), jnp.float32)
             .at[0, 0, :img_channels].set(_normal(ks[8], (img_channels,))))

    return dict(
        base_dim=base_dim, img_channels=img_channels, tdim=tdim,
        te_w1=_normal(ks[9], (base_dim, tdim)),
        te_b1=_normal(ks[10], (tdim,)).reshape(1, tdim),
        te_w2=_normal(ks[11], (tdim, tdim)),
        te_b2=_normal(ks[12], (tdim,)).reshape(1, tdim),
        wall=wall, ball=ball, blocks=blocks,
        out_w=out_w, out_b=out_b,
    )


# -----------------------------------------------------------------------------
# Forward pass
# -----------------------------------------------------------------------------
def resblock_forward(p, x, brow1, mask, H, W):
    # x: (B, H, W, cinp) bf16, channel-padded, spatially unpadded.
    xp1 = jnp.pad(x, ((0, 0), (1, 1), (1, 1), (0, 0)))
    h = fused_gn_silu_conv3x3(xp1, mask, p['gamma1'], p['beta1'], p['m1'], p['mt1'],
                              p['w1'], brow1, H=H, W=W, cin=p['cin'], groups=p['g1'])
    xp2 = jnp.pad(h, ((0, 0), (1, 1), (1, 1), (0, 0)))
    return fused_gn_silu_conv3x3(xp2, mask, p['gamma2'], p['beta2'], p['m2'], p['mt2'],
                                 p['w2'], p['brow2'], H=H, W=W, cin=p['cout'],
                                 groups=p['g2'], xres=x, wres=p['wr'],
                                 res_identity=p['res_identity'])


def cat_channels(a, ca, b, cb):
    c = ca + cb
    cp = _round_up(c)
    y = jnp.concatenate([a[..., :ca], b[..., :cb]], axis=-1)
    return jnp.pad(y, ((0, 0), (0, 0), (0, 0), (0, cp - c)))


def unet_forward(params, x_nchw, t):
    B, C, H, W = x_nchw.shape
    base = params['base_dim']
    blocks = params['blocks']

    # NCHW -> NHWC (channels on lanes), pad channels to 128, bf16 activations.
    cinp0 = blocks['down1']['cinp']
    x = jnp.transpose(x_nchw, (0, 2, 3, 1))
    x = jnp.pad(x, ((0, 0), (0, 0), (0, 0), (0, cinp0 - C))).astype(ACT_DTYPE)

    # spatial border mask shared by every fused GN+SiLU+conv kernel
    mask = jnp.pad(jnp.ones((H, W, 1), jnp.float32), ((1, 1), (1, 1), (0, 0)))

    # time embedding: sinusoid (tiny XLA glue) -> one Pallas kernel for both
    # MLP linears + every resblock's time projection (+ conv1 bias).
    inv_freq = jnp.exp(jnp.arange(0, base, 2, dtype=jnp.float32)
                       * (-math.log(10000.0) / base))
    pos = t[:, None] * inv_freq[None, :]
    temb0 = jnp.concatenate([jnp.sin(pos), jnp.cos(pos)], axis=-1)      # (B, base)
    tall = time_embed_forward(temb0, params['te_w1'], params['te_b1'],
                              params['te_w2'], params['te_b2'],
                              params['wall'], params['ball'])           # (B, sum coutp)

    def run(name, xin):
        p = blocks[name]
        brow1 = tall[:, p['toff']:p['toff'] + p['coutp']].reshape(B, 1, p['coutp'])
        return resblock_forward(p, xin, brow1, mask, H, W)

    d1 = run('down1', x)
    d2 = run('down2', d1)
    d3 = run('down3', d2)
    m = run('mid', d3)
    u3 = run('up3', cat_channels(d3, blocks['down3']['cout'], m, blocks['mid']['cout']))
    u2 = run('up2', cat_channels(d2, blocks['down2']['cout'], u3, blocks['up3']['cout']))
    u1 = run('up1', cat_channels(d1, blocks['down1']['cout'], u2, blocks['up2']['cout']))

    out = conv1x1(u1, params['out_w'], params['out_b'], H, W)           # (B,H,W,128) f32
    out = out[..., :params['img_channels']]
    return jnp.transpose(out, (0, 3, 1, 2))                             # back to NCHW


# -----------------------------------------------------------------------------
if __name__ == "__main__":
    key = jax.random.PRNGKey(0)
    kp, kx, kt = jax.random.split(key, 3)

    img_channels = 3
    base_dim = 8          # small, forward-consistent stand-in for default 64
    B, H, W = 2, 16, 16

    params = init_unet(kp, img_channels=img_channels, base_dim=base_dim)
    x = jax.random.normal(kx, (B, img_channels, H, W), dtype=jnp.float32)   # NCHW
    t = jax.random.randint(kt, (B,), 0, 1000).astype(jnp.float32)

    y = unet_forward(params, x, t)
    y = jax.block_until_ready(y)
    assert y.shape == (B, img_channels, H, W), y.shape
    assert bool(jnp.all(jnp.isfinite(y)))
    print("KERNEL_OK")
</pallas_src>

<mosaic_0001>
module attributes {stable_mosaic.version = 11 : i64} {
  func.func @time_embed_kernel(%arg0: i32, %arg1: memref<2x8xf32, #tpu.memory_space<vmem>>, %arg2: memref<8x32xf32, #tpu.memory_space<vmem>>, %arg3: memref<1x32xf32, #tpu.memory_space<vmem>>, %arg4: memref<32x32xf32, #tpu.memory_space<vmem>>, %arg5: memref<1x32xf32, #tpu.memory_space<vmem>>, %arg6: memref<32x896xf32, #tpu.memory_space<vmem>>, %arg7: memref<1x896xf32, #tpu.memory_space<vmem>>, %arg8: memref<2x896xf32, #tpu.memory_space<vmem>>) attributes {dimension_semantics = [#tpu.dimension_semantics<arbitrary>], iteration_bounds = array<i64: 1>, scalar_prefetch = 0 : i64, scratch_operands = 0 : i64, tpu.core_type = #tpu.core_type<tc>, window_params = [{pipeline_mode = #tpu.pipeline_mode<synchronous>, transform_indices = @transform_0, window_bounds = array<i64: 2, 8>}, {pipeline_mode = #tpu.pipeline_mode<synchronous>, transform_indices = @transform_1, window_bounds = array<i64: 8, 32>}, {pipeline_mode = #tpu.pipeline_mode<synchronous>, transform_indices = @transform_2, window_bounds = array<i64: 1, 32>}, {pipeline_mode = #tpu.pipeline_mode<synchronous>, transform_indices = @transform_3, window_bounds = array<i64: 32, 32>}, {pipeline_mode = #tpu.pipeline_mode<synchronous>, transform_indices = @transform_4, window_bounds = array<i64: 1, 32>}, {pipeline_mode = #tpu.pipeline_mode<synchronous>, transform_indices = @transform_5, window_bounds = array<i64: 32, 896>}, {pipeline_mode = #tpu.pipeline_mode<synchronous>, transform_indices = @transform_6, window_bounds = array<i64: 1, 896>}, {pipeline_mode = #tpu.pipeline_mode<synchronous>, transform_indices = @transform_7, window_bounds = array<i64: 2, 896>}]} {
    %c0 = arith.constant 0 : index
    %c0_0 = arith.constant 0 : index
    %0 = vector.load %arg1[%c0, %c0_0] : memref<2x8xf32, #tpu.memory_space<vmem>>, vector<2x8xf32>
    %c0_1 = arith.constant 0 : index
    %c0_2 = arith.constant 0 : index
    %1 = vector.load %arg2[%c0_1, %c0_2] : memref<8x32xf32, #tpu.memory_space<vmem>>, vector<8x32xf32>
    %cst = arith.constant dense<0.000000e+00> : vector<2x32xf32>
    %2 = tpu.matmul %0, %1, %cst {dimension_numbers = #tpu.dot_dimension_numbers<[1], [0], [0], [1], [0, 0, 1, 1], [], []>} : vector<2x8xf32>, vector<8x32xf32>, vector<2x32xf32> -> vector<2x32xf32>
    %c0_3 = arith.constant 0 : index
    %c0_4 = arith.constant 0 : index
    %3 = vector.load %arg3[%c0_3, %c0_4] : memref<1x32xf32, #tpu.memory_space<vmem>>, vector<1x32xf32>
    %4 = vector.broadcast %3 : vector<1x32xf32> to vector<2x32xf32>
    %5 = arith.addf %2, %4 : vector<2x32xf32>
    %cst_5 = arith.constant 0.000000e+00 : f32
    %6 = vector.broadcast %cst_5 : f32 to vector<2x32xf32>
    %7 = arith.subf %6, %5 : vector<2x32xf32>
    %8 = math.exp %7 : vector<2x32xf32>
    %cst_6 = arith.constant 1.000000e+00 : f32
    %9 = vector.broadcast %cst_6 : f32 to vector<2x32xf32>
    %10 = arith.addf %9, %8 : vector<2x32xf32>
    %cst_7 = arith.constant 1.000000e+00 : f32
    %11 = vector.broadcast %cst_7 : f32 to vector<2x32xf32>
    %12 = arith.divf %11, %10 : vector<2x32xf32>
    %13 = arith.mulf %5, %12 : vector<2x32xf32>
    %c0_8 = arith.constant 0 : index
    %c0_9 = arith.constant 0 : index
    %14 = vector.load %arg4[%c0_8, %c0_9] : memref<32x32xf32, #tpu.memory_space<vmem>>, vector<32x32xf32>
    %cst_10 = arith.constant dense<0.000000e+00> : vector<2x32xf32>
    %15 = tpu.matmul %13, %14, %cst_10 {dimension_numbers = #tpu.dot_dimension_numbers<[1], [0], [0], [1], [0, 0, 1, 1], [], []>} : vector<2x32xf32>, vector<32x32xf32>, vector<2x32xf32> -> vector<2x32xf32>
    %c0_11 = arith.constant 0 : index
    %c0_12 = arith.constant 0 : index
    %16 = vector.load %arg5[%c0_11, %c0_12] : memref<1x32xf32, #tpu.memory_space<vmem>>, vector<1x32xf32>
    %17 = vector.broadcast %16 : vector<1x32xf32> to vector<2x32xf32>
    %18 = arith.addf %15, %17 : vector<2x32xf32>
    %c0_13 = arith.constant 0 : index
    %c0_14 = arith.constant 0 : index
    %19 = vector.load %arg6[%c0_13, %c0_14] : memref<32x896xf32, #tpu.memory_space<vmem>>, vector<32x896xf32>
    %cst_15 = arith.constant dense<0.000000e+00> : vector<2x896xf32>
    %20 = tpu.matmul %18, %19, %cst_15 {dimension_numbers = #tpu.dot_dimension_numbers<[1], [0], [0], [1], [0, 0, 1, 1], [], []>} : vector<2x32xf32>, vector<32x896xf32>, vector<2x896xf32> -> vector<2x896xf32>
    %c0_16 = arith.constant 0 : index
    %c0_17 = arith.constant 0 : index
    %21 = vector.load %arg7[%c0_16, %c0_17] : memref<1x896xf32, #tpu.memory_space<vmem>>, vector<1x896xf32>
    %22 = vector.broadcast %21 : vector<1x896xf32> to vector<2x896xf32>
    %23 = arith.addf %20, %22 : vector<2x896xf32>
    %c0_18 = arith.constant 0 : index
    %c0_19 = arith.constant 0 : index
    %24 = vector.load %arg8[%c0_18, %c0_19] : memref<2x896xf32, #tpu.memory_space<vmem>>, vector<2x896xf32>
    tpu.vector_store %arg8[%c0_18, %c0_19], %23 {strides = array<i32>} : memref<2x896xf32, #tpu.memory_space<vmem>>, vector<2x896xf32>,
    return
  }
  func.func @transform_0(%arg0: i32) -> (i32, i32) {
    %c0_i32 = arith.constant 0 : i32
    %c0_i32_0 = arith.constant 0 : i32
    %c0_i32_1 = arith.constant 0 : i32
    return %c0_i32, %c0_i32_0 : i32, i32
  }
  func.func @transform_1(%arg0: i32) -> (i32, i32) {
    %c0_i32 = arith.constant 0 : i32
    %c0_i32_0 = arith.constant 0 : i32
    %c0_i32_1 = arith.constant 0 : i32
    return %c0_i32, %c0_i32_0 : i32, i32
  }
  func.func @transform_2(%arg0: i32) -> (i32, i32) {
    %c0_i32 = arith.constant 0 : i32
    %c0_i32_0 = arith.constant 0 : i32
    %c0_i32_1 = arith.constant 0 : i32
    return %c0_i32, %c0_i32_0 : i32, i32
  }
  func.func @transform_3(%arg0: i32) -> (i32, i32) {
    %c0_i32 = arith.constant 0 : i32
    %c0_i32_0 = arith.constant 0 : i32
    %c0_i32_1 = arith.constant 0 : i32
    return %c0_i32, %c0_i32_0 : i32, i32
  }
  func.func @transform_4(%arg0: i32) -> (i32, i32) {
    %c0_i32 = arith.constant 0 : i32
    %c0_i32_0 = arith.constant 0 : i32
    %c0_i32_1 = arith.constant 0 : i32
    return %c0_i32, %c0_i32_0 : i32, i32
  }
  func.func @transform_5(%arg0: i32) -> (i32, i32) {
    %c0_i32 = arith.constant 0 : i32
    %c0_i32_0 = arith.constant 0 : i32
    %c0_i32_1 = arith.constant 0 : i32
    return %c0_i32, %c0_i32_0 : i32, i32
  }
  func.func @transform_6(%arg0: i32) -> (i32, i32) {
    %c0_i32 = arith.constant 0 : i32
    %c0_i32_0 = arith.constant 0 : i32
    %c0_i32_1 = arith.constant 0 : i32
    return %c0_i32, %c0_i32_0 : i32, i32
  }
  func.func @transform_7(%arg0: i32) -> (i32, i32) {
    %c0_i32 = arith.constant 0 : i32
    %c0_i32_0 = arith.constant 0 : i32
    %c0_i32_1 = arith.constant 0 : i32
    return %c0_i32, %c0_i32_0 : i32, i32
  }
}

</mosaic_0001>

<bundles_post_ra>
// kernel: tpu_custom_call.1
= control target key start
LH: loop header
LB: loop body
LE: loop exit
PB: predicated region body
PF: predicated region fallthrough
CT: control target
= control target key end

     0   :  { %12 = vsyncpa [#allocation3], 0  ;;  %s674_s0 = inlined_call_operand.hbm [shape: f32[2,8], index: 0, kind: input, shape index: {}]   ;;  %s675_s1 = inlined_call_operand.hbm [shape: f32[8,32], index: 1, kind: input, shape index: {}]   ;;  %s676_s2 = inlined_call_operand.vmem [shape: f32[1,32], index: 2, kind: input, shape index: {}]   ;;  %s677_s3 = inlined_call_operand.hbm [shape: f32[32,32], index: 3, kind: input, shape index: {}]   ;;  %s678_s4 = inlined_call_operand.vmem [shape: f32[1,32], index: 4, kind: input, shape index: {}]   ;;  %s679_s5 = inlined_call_operand.hbm [shape: f32[32,896], index: 5, kind: input, shape index: {}]   ;;  %s680_s6 = inlined_call_operand.hbm [shape: f32[1,896], index: 6, kind: input, shape index: {}]   ;;  %s681_s7 = inlined_call_operand.hbm [shape: f32[2,896], index: 7, kind: output, shape index: {}]  }
   0x1   :  { %13 = vsyncpa [#allocation6], 0 }
   0x2   :  { %14 = vsyncpa [#allocation9], 0  ;;  %s32_s26 = sshll.u32 %s675_s1, 4  ;;  %s33_s26 = int_to_ptr.hbm [resolvable:$true] %s32_s26 }
   0x3   :  { %15 = vsyncpa [#allocation4], 0  ;;  %s588_s27 = smov [#allocation5]   ;;  %s59_s8 = sshll.u32 %s679_s5, 4  ;;  %s60_s8 = int_to_ptr.hbm [resolvable:$true] %s59_s8 }
   0x4   :  { %s34_s28 = sshll.u32 %s588_s27, 4  ;;  %s589_s9 = smov [#allocation8]   ;;  %s35_s28 = int_to_ptr.vmem [resolvable:$true] %s34_s28 }
   0x5   :  { %37 = dma.hbm_to_vmem [thread:$0]  %s33_s26, 128, %s35_s28, [#allocation6]  }
   0x6   :  { %s61_s10 = sshll.u32 %s589_s9, 4  ;;  %s590_s11 = smov 896   ;;  %s62_s10 = int_to_ptr.vmem [resolvable:$true] %s61_s10 }
   0x7   :  { %s591_s12 = smov 56   ;;  %s21_s1 = sshll.u32 %s674_s0, 4  ;;  %s22_s1 = int_to_ptr.hbm [resolvable:$true] %s21_s1 }
   0x8   :  { %67 = dma.hbm_to_vmem [thread:$0]  %s60_s8, 3584, %s62_s10, [#allocation9], %s590_s11, %s590_s11, %s591_s12  }
   0x9   :  { %s592_s15 = smov [#allocation2]   ;;  %s44_s5 = sshll.u32 %s677_s3, 4  ;;  %s45_s5 = int_to_ptr.hbm [resolvable:$true] %s44_s5 }
   0xa   :  { %s23_s16 = sshll.u32 %s592_s15, 4  ;;  %s593_s19 = smov [#allocation7]   ;;  %s24_s16 = int_to_ptr.vmem [resolvable:$true] %s23_s16 }
   0xb   :  { %26 = dma.hbm_to_vmem [thread:$0]  %s22_s1, 32, %s24_s16, [#allocation3]  }
   0xc   :  { %s46_s20 = sshll.u32 %s593_s19, 4  ;;  %s594_s21 = smov 128   ;;  %s47_s20 = int_to_ptr.vmem [resolvable:$true] %s46_s20 }
   0xd   :  { %s595_s22 = smov 8   ;;  %s73_s0 = sshll.u32 %s680_s6, 4  ;;  %s74_s0 = int_to_ptr.hbm [resolvable:$true] %s73_s0 }
   0xe   :  { %52 = dma.hbm_to_vmem [thread:$0]  %s45_s5, 512, %s47_s20, [#allocation6], %s594_s21, %s594_s21, %s595_s22  }
   0xf   :  { %s596_s25 = smov [#allocation10]  }
  0x10   :  { %s75_s26 = sshll.u32 %s596_s25, 4  ;;  %s76_s26 = int_to_ptr.vmem [resolvable:$true] %s75_s26 }
  0x11   :  { %78 = dma.hbm_to_vmem [thread:$0]  %s74_s0, 112, %s76_s26, [#allocation9]  }
  0x12   :  { %580 = dma.done.wait [#allocation3], 32  }
  0x13   :  { %581 = vsyncadd [#allocation3], 4294967264 }
  0x14   :  { %582 = dma.done.wait [#allocation6], 640  }
  0x15   :  { %583 = vsyncadd [#allocation6], 4294966656 }
  0x16   :  { %584 = dma.done.wait [#allocation9], 3696  }
  0x17   :  { %585 = vsyncadd [#allocation9], 4294963600  ;;  %vm105_vm0 = vcmask 64512   ;;  %v100_v0 = vld [vmem:[#allocation5] sm:$0xff]  ;;  %v99_v1 = vld [vmem:[#allocation2] sm:$0x3] }
  0x18   :  { %124 = vmatpush.msra.mxu0 %v100_v0  ;;  %v152_v2 = vld [vmem:[#allocation7 + $0x18] sm:$0xff]  ;;  %v430_v3 = vld [vmem:[%s676_s2] ss:$0 sm:$0xff]  ;;  %v150_v5 = vld [vmem:[#allocation7 + $0x8] sm:$0xff]  ;;  %vm157_vm5 = vcmask 261120   ;;  %vm382_vm6 = vcmask 1045508  }
  0x19   :  { %411 = vmatmul.msk.f32.vlgmr.msra.gmra.mxu0 %vm105_vm0, %v99_v1  ;;  %173 = vmatpush.msra.mxu1 %v152_v2  ;;  %v151_v4 = vld [vmem:[#allocation7 + $0x10] sm:$0xff]  ;;  %v149_v8 = vld [vmem:[#allocation7] sm:$0xff]  ;;  %v202_v10 = vld [vmem:[#allocation8 + $0xa8] sm:$0xff]  ;;  %vm380_vm7 = vcmask 1041408   ;;  %vm384_vm8 = vcmask 1043456   ;;  %s399_s8 = sshll.u32 %s681_s7, 4  ;;  %s400_s8 = int_to_ptr.hbm [resolvable:$true] %s399_s8 }
  0x1a   :  { %v203_v11 = vld [vmem:[#allocation8 + $0xb0] sm:$0xff]  ;;  %v204_v12 = vld [vmem:[#allocation8 + $0xb8] sm:$0xff]  ;;  %240 = vmatpush.msra.mxu2 %v202_v10  ;;  %v205_v13 = vld [vmem:[#allocation8 + $0xc0] sm:$0xff] }
  0x1b   :  { %174 = vmatpush.msra.mxu1 %v151_v4  ;;  %260 = vmatpush.msra.mxu3 %v203_v11  ;;  %v195_v14 = vld [vmem:[#allocation8 + $0x70] sm:$0xff]  ;;  %v196_v15 = vld [vmem:[#allocation8 + $0x78] sm:$0xff]  ;;  %v197_v17 = vld [vmem:[#allocation8 + $0x80] sm:$0xff] }
  0x1c   :  { %280 = vmatpush.msrb.mxu0 %v204_v12  ;;  %v198_v18 = vld [vmem:[#allocation8 + $0x88] sm:$0xff]  ;;  %241 = vmatpush.msra.mxu2 %v195_v14  ;;  %v188_v32 = vld [vmem:[#allocation8 + $0x38] sm:$0xff]  ;;  %v189_v33 = vld [vmem:[#allocation8 + $0x40] sm:$0xff] }
  0x1d   :  { %175 = vmatpush.msra.mxu1 %v150_v5  ;;  %261 = vmatpush.msra.mxu3 %v196_v15  ;;  %v190_v34 = vld [vmem:[#allocation8 + $0x48] sm:$0xff]  ;;  %v191_v35 = vld [vmem:[#allocation8 + $0x50] sm:$0xff]  ;;  %v181_v36 = vld [vmem:[#allocation8] sm:$0xff] }
  0x1e   :  { %281 = vmatpush.msrb.mxu0 %v197_v17  ;;  %242 = vmatpush.msra.mxu2 %v188_v32  ;;  %v182_v37 = vld [vmem:[#allocation8 + $0x8] sm:$0xff]  ;;  %v183_v38 = vld [vmem:[#allocation8 + $0x10] sm:$0xff]  ;;  %v184_v39 = vld [vmem:[#allocation8 + $0x18] sm:$0xff] }
  0x1f   :  { %176 = vmatpush.msra.mxu1 %v149_v8  ;;  %262 = vmatpush.msra.mxu3 %v189_v33  ;;  %v207_v40 = vld [vmem:[#allocation8 + $0xd0] sm:$0xff]  ;;  %v206_v41 = vld [vmem:[#allocation8 + $0xc8] sm:$0xff]  ;;  %v208_v42 = vld [vmem:[#allocation8 + $0xd8] sm:$0xff] }
  0x20   :  { %282 = vmatpush.msrb.mxu0 %v190_v34  ;;  %243 = vmatpush.msra.mxu2 %v181_v36  ;;  %v200_v43 = vld [vmem:[#allocation8 + $0x98] sm:$0xff]  ;;  %v199_v44 = vld [vmem:[#allocation8 + $0x90] sm:$0xff]  ;;  %v201_v45 = vld [vmem:[#allocation8 + $0xa0] sm:$0xff] }
  0x21   :  { %300 = vmatpush.msrb.mxu1 %v205_v13  ;;  %263 = vmatpush.msra.mxu3 %v182_v37  ;;  %v193_v46 = vld [vmem:[#allocation8 + $0x60] sm:$0xff]  ;;  %v192_v47 = vld [vmem:[#allocation8 + $0x58] sm:$0xff]  ;;  %v194_v48 = vld [vmem:[#allocation8 + $0x68] sm:$0xff] }
  0x22   :  { %283 = vmatpush.msrb.mxu0 %v183_v38  ;;  %320 = vmatpush.msrb.mxu2 %v206_v41  ;;  %v186_v49 = vld [vmem:[#allocation8 + $0x28] sm:$0xff]  ;;  %v185_v50 = vld [vmem:[#allocation8 + $0x20] sm:$0xff]  ;;  %v187_v51 = vld [vmem:[#allocation8 + $0x30] sm:$0xff] }
  0x23   :  { %301 = vmatpush.msrb.mxu1 %v198_v18  ;;  %340 = vmatpush.msrb.mxu3 %v207_v40  ;;  %v431_v52 = vld [vmem:[%s678_s4] ss:$0 sm:$0xff]  ;;  %v209_v55 = vld [vmem:[#allocation10] sm:$0xff]  ;;  %s597_s4 = smov [#allocation11]  }
  0x24   :  { %360 = vmatpush.msra.mxu0 %v208_v42  ;;  %321 = vmatpush.msrb.mxu2 %v199_v44  ;;  %v213_v56 = vperm.slane %v209_v55, 2  ;;  %v214_v57 = vperm.slane %v209_v55, 3  ;;  %v212_v62 = vperm.slane %v209_v55, 1  ;;  %v211_v63 = vperm.slane %v209_v55, 0  ;;  %s397_s28 = sshll.u32 %s597_s4, 4  ;;  %s398_s28 = int_to_ptr.vmem [resolvable:$true] %s397_s28 }
  0x25   :  { %302 = vmatpush.msrb.mxu1 %v191_v35  ;;  %341 = vmatpush.msrb.mxu3 %v200_v43  ;;  %v216_v11 = vperm.slane %v209_v55, 5  ;;  %v215_v13 = vperm.slane %v209_v55, 4 }
  0x26   :  { %361 = vmatpush.msra.mxu0 %v201_v45  ;;  %322 = vmatpush.msrb.mxu2 %v192_v47 }
  0x27   :  { %303 = vmatpush.msrb.mxu1 %v184_v39  ;;  %342 = vmatpush.msrb.mxu3 %v193_v46 }
  0x28   :  { %362 = vmatpush.msra.mxu0 %v194_v48  ;;  %323 = vmatpush.msrb.mxu2 %v185_v50 }
  0x29   :  { %343 = vmatpush.msrb.mxu3 %v186_v49 }
  0x2a   :  { %363 = vmatpush.msra.mxu0 %v187_v51 }
  0x96   :  { %v126_v6 = vpop.f32.mrf.mxu0 }
  0x97   :  { %v127_v7 = vadd.f32 %v430_v3, %v126_v6 }
  0x99   :  { %v129_v9 = vsub.f32 0.0, %v127_v7 }
  0x9b   :  { %v130_v16 = vmul.f32 1.442695, %v129_v9 }
  0x9d   :  { %432 = vpow2.f32 %v130_v16 }
  0xa3   :  { %v433_v19 = vpop.eup %432 }
  0xa4   :  { %v132_v20 = vadd.f32 1.0, %v433_v19 }
  0xa6   :  { %434 = vrcp.f32 %v132_v20  ;;  %v144_v24 = vand.u32 2147483648, %v132_v20  ;;  %v142_v26 = vand.u32 2147483647, %v132_v20  ;;  %vm138_vm2 = vweird.f32 %v132_v20 }
  0xa8   :  { %v145_v28 = vor.u32 1.1754944e-38, %v144_v24  ;;  %vm143_vm4 = vcmp.eq.f32.partialorder %v142_v26, 8.507059e+37 }
  0xac   :  { %v435_v21 = vpop.eup %434 }
  0xad   :  { %v134_v22 = vmul.f32 %v435_v21, %v132_v20  ;;  %vm139_vm1 = vweird.f32 %v435_v21 }
  0xae   :  { %vm140_vm3 = vmor %vm138_vm2, %vm139_vm1 }
  0xaf   :  { %v135_v23 = vsub.f32 1.0, %v134_v22 }
  0xb1   :  { %v136_v25 = vmul.f32 %v435_v21, %v135_v23 }
  0xb3   :  { %v137_v27 = vadd.f32 %v435_v21, %v136_v25 }
  0xb5   :  { %v141_v29 = vsel %vm140_vm3, %v435_v21, %v137_v27 }
  0xb6   :  { %v146_v30 = vsel %vm143_vm4, %v145_v28, %v141_v29 }
  0xb7   :  { %v148_v31 = vmul.f32 %v146_v30, %v127_v7  ;;  %v217_v7 = vperm.slane %v209_v55, 6 }
  0xb9   :  { %412 = vmatmul.msk.f32.vlgmr.msra.gmra.mxu1 %vm157_vm5, %v148_v31 }
 0x136   :  { %v178_v53 = vpop.f32.mrf.mxu1 }
 0x137   :  { %v179_v54 = vadd.f32 %v431_v52, %v178_v53 }
 0x139   :  { %413 = vmatmul.msk.f32.vlgmr.msra.gmra.mxu2 %vm157_vm5, %v179_v54  ;;  %414 = vmatmul.msk.f32.vlgmr.msra.gmra.mxu3 %vm157_vm5, %v179_v54 }
 0x13a   :  { %415 = vmatmul.msk.f32.vlgmr.msrb.gmra.mxu0 %vm157_vm5, %v179_v54  ;;  %416 = vmatmul.msk.f32.vlgmr.msrb.gmra.mxu1 %vm157_vm5, %v179_v54 }
 0x141   :  { %417 = vmatmul.msk.f32.vlgmr.msrb.gmra.mxu2 %vm157_vm5, %v179_v54  ;;  %418 = vmatmul.msk.f32.vlgmr.msrb.gmra.mxu3 %vm157_vm5, %v179_v54 }
 0x142   :  { %419 = vmatmul.msk.f32.vlgmr.msra.gmra.mxu0 %vm157_vm5, %v179_v54 }
 0x1b7   :  { %v285_v58 = vpop.f32.mrf.mxu0  ;;  %v305_v59 = vpop.f32.mrf.mxu1 }
 0x1b8   :  { %v286_v60 = vadd.f32 %v285_v58, %v213_v56  ;;  %v306_v61 = vadd.f32 %v305_v59, %v214_v57 }
 0x1ba   :  { %v376_v2 = vrot.slane %v286_v60, 4  ;;  %v377_v3 = vrot.slane %v306_v61, 2 }
 0x1bc   :  { %v245_v0 = vpop.f32.mrf.mxu2  ;;  %v265_v1 = vpop.f32.mrf.mxu3  ;;  %v383_v8 = vsel %vm382_vm6, %v376_v2, %v377_v3 }
 0x1bd   :  { %v266_v4 = vadd.f32 %v265_v1, %v212_v62  ;;  %v246_v5 = vadd.f32 %v245_v0, %v211_v63 }
 0x1bf   :  { %v375_v6 = vrot.slane %v266_v4, 6  ;;  %v365_v10 = vpop.f32.mrf.mxu0 }
 0x1c0   :  { %v366_v14 = vadd.f32 %v365_v10, %v217_v7 }
 0x1c1   :  { %v381_v9 = vsel %vm380_vm7, %v246_v5, %v375_v6 }
 0x1c2   :  { %v385_v12 = vsel %vm384_vm8, %v381_v9, %v383_v8  ;;  %v379_v20 = vrot.slane %v366_v14, 4 }
 0x1c3   :  { %390 = vst [vmem:[#allocation11] sm:$0xff] %v385_v12 }
 0x1c4   :  { %v325_v15 = vpop.f32.mrf.mxu2  ;;  %v345_v16 = vpop.f32.mrf.mxu3 }
 0x1c5   :  { %v346_v17 = vadd.f32 %v345_v16, %v216_v11  ;;  %v326_v18 = vadd.f32 %v325_v15, %v215_v13 }
 0x1c7   :  { %v378_v19 = vrot.slane %v346_v17, 6 }
 0x1c9   :  { %v386_v21 = vsel %vm380_vm7, %v326_v18, %v378_v19 }
 0x1ca   :  { %v387_v22 = vsel %vm384_vm8, %v386_v21, %v379_v20 }
 0x1cb   :  { %391 = vst [vmem:[#allocation11 + $0x8] sm:$0x3f] %v387_v22 }
 0x1cc   :  { %402 = dma.vmem_to_hbm [thread:$0]  %s398_s28, 224, %s400_s8, [#allocation4]  }
 0x1cd   :  { %586 = dma.done.wait [#allocation4], 224  }
 0x1ce   :  { %587 = vsyncadd [#allocation4], 4294967072 }
 0x1cf   :  { %407 = vsyncpa [#allocation3], 1 }
 0x1d0   :  { %408 = vsyncpa [#allocation6], 1 }
 0x1d1   :  { %409 = vsyncpa [#allocation9], 1 }
 0x1d2   :  { %410 = vsyncpa [#allocation4], 1 }

</bundles_post_ra>
